<compile_context>
chip_gen: v6e
topology: v6e:2x2x1
jax: 0.10.0
libtpu: 0.0.40
codegen_flags: <defaults>
</compile_context>

<pallas_src>
import jax
import jax.numpy as jnp
from jax.experimental import pallas as pl
from jax.experimental.pallas import tpu as pltpu


def _round_up(x, m):
    return (x + m - 1) // m * m


def _matmul_bias_kernel(w_ref, c_ref, o_ref):
    """(Cout_pad, Kp) x (Kp, TM) -> (Cout_pad, TM), f32 accumulation on the MXU.

    Bias is already folded into w_ref (last valid column) / the ones-row of
    c_ref, so this is the whole conv compute for one lane tile.
    """
    o_ref[...] = jnp.dot(
        w_ref[...], c_ref[...], preferred_element_type=jnp.float32
    ).astype(o_ref.dtype)


def conv_layer(x_nchw, weight, bias, stride, *, compute_dtype=None):
    """Equivalent of ConvLayer.forward (reflection pad + Conv2d).

    x_nchw : (N, Cin, H, W)
    weight : (Cout, Cin, KH, KW)   (PyTorch Conv2d layout)
    bias   : (Cout,)
    compute_dtype : dtype of the MXU operands (default: x dtype). bf16 keeps
                    f32 accumulation and is recommended on v5e/v6e/v7x.
    """
    N, cin, H, W = x_nchw.shape
    cout, cin_w, KH, KW = weight.shape
    assert cin == cin_w, (cin, cin_w)
    pad = KH // 2                      # reflection_padding = kernel_size // 2
    assert pad < H and pad < W, "ReflectionPad2d requires pad < H and pad < W"
    OH = (H + 2 * pad - KH) // stride + 1
    OW = (W + 2 * pad - KW) // stride + 1
    K = KH * KW * cin                  # contraction size
    M = N * OH * OW                    # lane dimension (batch folded in)
    out_dtype = x_nchw.dtype
    if compute_dtype is None:
        compute_dtype = x_nchw.dtype

    # ---- layout prep in XLA (tiny at these shapes; review item 2(c)) -------
    xp = jnp.pad(x_nchw, ((0, 0), (0, 0), (pad, pad), (pad, pad)),
                 mode="reflect")                                   # (N,Cin,Hp,Wp)

    # im2col: k index = (i*KW + j)*Cin + ci, m index = n*OH*OW + oh*OW + ow.
    taps = []
    for i in range(KH):
        for j in range(KW):
            h_lim = i + (OH - 1) * stride + 1
            w_lim = j + (OW - 1) * stride + 1
            taps.append(xp[:, :, i:h_lim:stride, j:w_lim:stride])  # (N,Cin,OH,OW)
    cols = jnp.stack(taps, axis=0)                                 # (KH*KW,N,Cin,OH,OW)
    cols = jnp.transpose(cols, (0, 2, 1, 3, 4)).reshape(K, M)      # (K, N*OH*OW)
    # Fold bias in as an extra ones-row / weight column.
    cols = jnp.concatenate([cols, jnp.ones((1, M), cols.dtype)], axis=0)   # (K+1, M)

    w2 = jnp.transpose(weight, (0, 2, 3, 1)).reshape(cout, K)      # (Cout, K)
    w2 = jnp.concatenate([w2, bias.reshape(cout, 1)], axis=1)      # (Cout, K+1)

    # ---- padded, MXU/vreg-friendly shapes ----------------------------------
    cout_pad = _round_up(cout, 8)
    kp = _round_up(K + 1, 8)
    itemsize = jnp.dtype(compute_dtype).itemsize
    out_itemsize = jnp.dtype(out_dtype).itemsize

    # Generation-aware VMEM capacity (v5e/v6e: 128 MiB, v7x: 64 MiB per TC).
    try:
        vmem_cap = int(pltpu.get_tpu_info().vmem_capacity_bytes)
    except Exception:
        vmem_cap = 64 << 20  # conservative (v7x per-TC)

    # Lane tile: multiple of 128, >= 2 parallel grid steps when possible
    # (keeps both v7x TensorCores busy), and blocks well under VMEM.
    tm = 512
    while tm > 128 and pl.cdiv(M, tm) < 2:
        tm //= 2
    while tm > 128 and 2 * kp * tm * itemsize > vmem_cap // 4:
        tm //= 2
    m_pad = _round_up(M, tm)

    w_aug = jnp.zeros((cout_pad, kp), compute_dtype)
    w_aug = w_aug.at[:cout, :K + 1].set(w2.astype(compute_dtype))
    cols_p = jnp.zeros((kp, m_pad), compute_dtype)
    cols_p = cols_p.at[:K + 1, :M].set(cols.astype(compute_dtype))

    # VMEM budget from real (double-buffered) block sizes; no artificial floor
    # beyond a modest 16 MiB, capped at 3/4 of this generation's capacity.
    need = (2 * cout_pad * kp * itemsize        # stationary weight block
            + 2 * kp * tm * itemsize            # double-buffered column tiles
            + 2 * cout_pad * tm * out_itemsize) # double-buffered output tiles
    vmem_limit = int(min(max(2 * need, 16 << 20), vmem_cap * 3 // 4))

    out2d = pl.pallas_call(
        _matmul_bias_kernel,
        out_shape=jax.ShapeDtypeStruct((cout_pad, m_pad), out_dtype),
        grid=(m_pad // tm,),
        in_specs=[
            pl.BlockSpec((cout_pad, kp), lambda t: (0, 0)),   # stationary weights
            pl.BlockSpec((kp, tm), lambda t: (0, t)),         # lane-dense cols tile
        ],
        out_specs=pl.BlockSpec((cout_pad, tm), lambda t: (0, t)),
        compiler_params=pltpu.CompilerParams(
            dimension_semantics=("parallel",),
            vmem_limit_bytes=vmem_limit,
        ),
    )(w_aug, cols_p)

    # Strip padding and restore NCHW (small XLA transpose; no in-kernel relayout).
    out = out2d[:cout, :M].reshape(cout, N, OH, OW)
    return jnp.transpose(out, (1, 0, 2, 3))


def _reference(x_nchw, weight, bias, stride):
    """Pure-JAX reference (reflection pad + conv) for verification."""
    pad = weight.shape[2] // 2
    xp = jnp.pad(x_nchw, ((0, 0), (0, 0), (pad, pad), (pad, pad)), mode="reflect")
    out = jax.lax.conv_general_dilated(
        xp, weight, window_strides=(stride, stride), padding="VALID",
        dimension_numbers=("NCHW", "OIHW", "NCHW"))
    return out + bias.reshape(1, -1, 1, 1)


if __name__ == "__main__":
    # Small shapes consistent with the module: ConvLayer(4, 8, kernel_size=3, stride=1)
    N, CIN, COUT, H, W, K, STRIDE = 2, 4, 8, 16, 16, 3, 1

    key = jax.random.PRNGKey(0)
    kx, kw_, kb = jax.random.split(key, 3)
    x = jax.random.normal(kx, (N, CIN, H, W), dtype=jnp.float32)
    fan_in = CIN * K * K
    bound = 1.0 / (fan_in ** 0.5)
    weight = jax.random.uniform(kw_, (COUT, CIN, K, K), jnp.float32, -bound, bound)
    bias = jax.random.uniform(kb, (COUT,), jnp.float32, -bound, bound)

    ref = _reference(x, weight, bias, STRIDE)

    # f32 MXU operands (exact semantics of the PyTorch module).
    out = jax.block_until_ready(conv_layer(x, weight, bias, STRIDE))
    assert out.shape == ref.shape, (out.shape, ref.shape)
    assert jnp.allclose(out, ref, atol=1e-4, rtol=1e-4), "f32 mismatch vs reference"

    # bf16 MXU operands, f32 accumulation (recommended path on v5e/v6e/v7x).
    out_bf16 = jax.block_until_ready(
        conv_layer(x, weight, bias, STRIDE, compute_dtype=jnp.bfloat16))
    assert jnp.allclose(out_bf16, ref, atol=5e-2, rtol=5e-2), "bf16 mismatch vs reference"

    print("KERNEL_OK")
</pallas_src>

<mosaic_0001>
module attributes {stable_mosaic.version = 11 : i64} {
  func.func @_matmul_bias_kernel(%arg0: i32, %arg1: memref<8x40xf32, #tpu.memory_space<vmem>>, %arg2: memref<40x256xf32, #tpu.memory_space<vmem>>, %arg3: memref<8x256xf32, #tpu.memory_space<vmem>>) attributes {dimension_semantics = [#tpu.dimension_semantics<parallel>], iteration_bounds = array<i64: 2>, scalar_prefetch = 0 : i64, scratch_operands = 0 : i64, tpu.core_type = #tpu.core_type<tc>, window_params = [{pipeline_mode = #tpu.pipeline_mode<synchronous>, transform_indices = @transform_0, window_bounds = array<i64: 8, 40>}, {transform_indices = @transform_1, window_bounds = array<i64: 40, 256>}, {transform_indices = @transform_2, window_bounds = array<i64: 8, 256>}]} {
    %c0 = arith.constant 0 : index
    %c0_0 = arith.constant 0 : index
    %0 = vector.load %arg1[%c0, %c0_0] : memref<8x40xf32, #tpu.memory_space<vmem>>, vector<8x40xf32>
    %c0_1 = arith.constant 0 : index
    %c0_2 = arith.constant 0 : index
    %1 = vector.load %arg2[%c0_1, %c0_2] : memref<40x256xf32, #tpu.memory_space<vmem>>, vector<40x256xf32>
    %cst = arith.constant dense<0.000000e+00> : vector<8x256xf32>
    %2 = tpu.matmul %0, %1, %cst {dimension_numbers = #tpu.dot_dimension_numbers<[1], [0], [0], [1], [0, 0, 1, 1], [], []>} : vector<8x40xf32>, vector<40x256xf32>, vector<8x256xf32> -> vector<8x256xf32>
    %c0_3 = arith.constant 0 : index
    %c0_4 = arith.constant 0 : index
    %3 = vector.load %arg3[%c0_3, %c0_4] : memref<8x256xf32, #tpu.memory_space<vmem>>, vector<8x256xf32>
    tpu.vector_store %arg3[%c0_3, %c0_4], %2 {strides = array<i32>} : memref<8x256xf32, #tpu.memory_space<vmem>>, vector<8x256xf32>,
    return
  }
  func.func @transform_0(%arg0: i32) -> (i32, i32) {
    %c0_i32 = arith.constant 0 : i32
    %c0_i32_0 = arith.constant 0 : i32
    %c0_i32_1 = arith.constant 0 : i32
    return %c0_i32, %c0_i32_0 : i32, i32
  }
  func.func @transform_1(%arg0: i32) -> (i32, i32) {
    %c0_i32 = arith.constant 0 : i32
    %c0_i32_0 = arith.constant 0 : i32
    return %c0_i32, %arg0 : i32, i32
  }
  func.func @transform_2(%arg0: i32) -> (i32, i32) {
    %c0_i32 = arith.constant 0 : i32
    %c0_i32_0 = arith.constant 0 : i32
    return %c0_i32, %arg0 : i32, i32
  }
}

</mosaic_0001>

<bundles_post_ra>
// kernel: tpu_custom_call.1
= control target key start
LH: loop header
LB: loop body
LE: loop exit
PB: predicated region body
PF: predicated region fallthrough
CT: control target
= control target key end

     0   :  { %7 = vsyncpa [#allocation3], 0  ;;  %s762_s0 = inlined_call_operand.hbm [shape: f32[8,40], index: 0, kind: input, shape index: {}]   ;;  %s763_s1 = inlined_call_operand.hbm [shape: f32[40,512], index: 1, kind: input, shape index: {}]   ;;  %s764_s2 = inlined_call_operand.hbm [shape: f32[8,512], index: 2, kind: output, shape index: {}]  }
   0x1   :  { %8 = vsyncpa [#allocation6], 0 }
   0x2   :  { %10 = vsyncpa [#allocation6 + $0x1], 0 }
   0x3   :  { %11 = vsyncpa [#allocation4], 0 }
   0x4   :  { %13 = vsyncpa [#allocation4 + $0x1], 0  ;;  %s588_s9 = smov 0   ;;  %s590_s10 = smov 0  }
   0x5   :  { %s592_s11 = smov 0   ;;  %s594_s12 = smov 0  }
   0x6 LB: > { %s609_s13 = sadd.s32 4294967295, %s564_s12   ;;  %s362_s14 = sadd.s32 4294967294, %s564_s12   ;;  %s564_s12 = sphi %s594_s12, %s787_s12   ;;  %s560_s11 = sphi %s592_s11, %s786_s11   ;;  %s556_s10 = sphi %s590_s10, %s785_s10   ;;  %s552_s9 = sphi %s588_s9, %s784_s9  }
   0x7   : > { %s613_s15 = sadd.s32 1, %s564_s12   ;;  %s47_s16 = sadd.s32 1, %s560_s11 }
   0x8   : > { %s44_s17 = ssub.s32 %s564_s12, %s613_s15  ;;  %p54_p0 = scmp.ne.s32.totalorder %s560_s11, %s556_s10 }
   0x9   : > { %p45_p1 = scmp.eq.s32.totalorder %s44_s17, 0  ;;  %p55_p2 = scmp.eq.s32.totalorder %s564_s12, 0 }
   0xa   : > { %p60_p3 = scmp.ne.s32.totalorder %s556_s10, %s552_s9  ;;  %p765_p4 = scmp.eq.s32.totalorder %s609_s13, 0 }
   0xb   : > { %s625_s18 = scalar_select %p45_p1, %s560_s11, %s47_s16  }
   0xc   : > { %p627_p5 = por %p55_p2, %p54_p0  ;;  %p633_p6 = por %p765_p4, %p60_p3 }
   0xd   : > { %p84_p7 = scmp.eq.s32.totalorder %s609_s13, 1  ;;  %p90_p8 = scmp.eq.s32.totalorder %s362_s14, 1 }
   0xe   : > { %s770_s20 = scalar_select %p633_p6, 1, 0 }
   0xf   : > { %p363_p9 = scmp.ge.s32.totalorder %s564_s12, 1  ;;  %p97_p10 = scmp.lt.s32.totalorder %s564_s12, 3 }
  0x10   : > { %p640_p11 = por %p84_p7, %p54_p0  ;;  %p644_p12 = por %p90_p8, %p60_p3 }
  0x11   : > { %p648_p13 = pnand %p363_p9, %p97_p10  ;;  %s566_s24 = smov [#allocation2]  }
  0x12   : > { %s771_s21 = scalar_select %p640_p11, 1, 0 }
  0x13   : > { %s772_s22 = scalar_select %p644_p12, 1, 0 }
  0x14   : > { %s773_s23 = scalar_select %p648_p13, 1, 0 }
  0x15   : > { %p389_p2 = pneg %p648_p13  ;;  %s110_s25 = sshll.u32 %s566_s24, 4  ;;  %s111_s25 = int_to_ptr.vmem [resolvable:$true] %s110_s25 }
  0x16   : > { %p402_p4 = scmp.lt.s32.totalorder %s564_s12, 2  ;;  %p774_p0 = scmp.eq.s32.totalorder %s609_s13, 0 }
  0x17   : > { %s121_s27 = sand.u32 1, %s560_s11   ;;  %s453_s30 = scalar_lea.vmem %s111_s25, 128 }
  0x18   : > { %p658_p7 = pnand %p389_p2, %p774_p0  ;;  %p665_p3 = pnand %p402_p4, %p627_p5 }
  0x19   : > { %s379_s29 = smul.u32 80, %s121_s27  ;;  %p454_p9 = scmp.ne.s32.totalorder %s111_s25, %s453_s30 }
  0x1a   : > { %p444_p8 = pneg %p658_p7  ;;  %p461_p12 = scmp.lt.s32.totalorder %s111_s25, %s111_s25 }
  0x1b   : > { %p462_p11 = scmp.lt.s32.totalorder %s453_s30, %s453_s30 }
  0x1c   : > { %p456_p10 = pnand %p454_p9, %p444_p8 }
  0x1d   : > { %p463_p2 = por %p462_p11, %p461_p12 }
  0x1e   : > { %p457_p1 = pneg %p456_p10 }
  0x20   : > { %p464_p0 = pnand %p463_p2, %p457_p1 }
  0x22   : > { %467 = shalt.err (!%p464_p0)
}
  0x23   : > { %392 = dma.hbm_to_vmem [thread:$0]  (!%p658_p7), %s762_s0, 128, %s111_s25, [#allocation3]  }
  0x24   : > { %s377_s5 = sshll.u32 %s564_s12, 8  ;;  %s125_s6 = scalar_lea.vmem [#allocation5], %s379_s29 }
  0x25   : > { %s132_s7 = sshll.u32 %s125_s6, 4  ;;  %s680_s16 = scalar_lea.hbm %s763_s1, %s377_s5  ;;  %s682_s7 = int_to_ptr.vmem [resolvable:$true] %s132_s7 }
  0x26   : > { %s684_s17 = scalar_lea.sflag [#allocation6], %s121_s27  ;;  %s468_s19 = scalar_lea.hbm %s680_s16, 1280 }
  0x27   : > { %p469_p4 = scmp.ne.s32.totalorder %s680_s16, %s468_s19  ;;  %p470_p5 = pneg %p665_p3 }
  0x28   : > { %s473_s26 = scalar_lea.hbm %s763_s1, 2560  ;;  %p474_p1 = scmp.lt.s32.totalorder %s680_s16, %s763_s1 }
  0x29   : > { %p471_p11 = pnand %p470_p5, %p469_p4  ;;  %p475_p7 = scmp.lt.s32.totalorder %s473_s26, %s468_s19 }
  0x2b   : > { %p472_p12 = pneg %p471_p11  ;;  %p476_p8 = por %p475_p7, %p474_p1 }
  0x2d   : > { %p477_p9 = pnand %p476_p8, %p472_p12 }
  0x2f   : > { %480 = shalt.err (!%p477_p9)
}
  0x30   : > { %s481_s27 = scalar_lea.vmem %s682_s7, 1280  ;;  %s567_s3 = smov [#allocation5]  }
  0x31   : > { %p482_p10 = scmp.ne.s32.totalorder %s682_s7, %s481_s27  ;;  %s486_s4 = sshll.u32 %s567_s3, 4  ;;  %s487_s4 = int_to_ptr.vmem [resolvable:$false] %s486_s4 }
  0x32   : > { %s488_s5 = scalar_lea.vmem %s487_s4, 2560  ;;  %p489_p4 = scmp.lt.s32.totalorder %s682_s7, %s487_s4 }
  0x33   : > { %p484_p2 = pnand %p482_p10, %p470_p5  ;;  %p490_p11 = scmp.lt.s32.totalorder %s488_s5, %s481_s27 }
  0x35   : > { %p485_p0 = pneg %p484_p2  ;;  %p491_p6 = por %p490_p11, %p489_p4 }
  0x37   : > { %p492_p13 = pnand %p491_p6, %p485_p0 }
  0x39   : > { %495 = shalt.err (!%p492_p13)
}
  0x3a   : > { %s568_s6 = smov 512   ;;  %s569_s8 = smov 256  }
  0x3b   : > { %s570_s14 = smov 16   ;;  %p777_p5 = scmp.ne.s32.totalorder %s773_s23, 0 }
  0x3c   : > { %396 = dma.hbm_to_vmem [thread:$0]  (!%p665_p3), %s680_s16, 1280, %s682_s7, %s684_s17, %s568_s6, %s569_s8, %s570_s14  }
  0x3d   : > { %144 = sbr.rel (%p777_p5) target bundleno = 291 (0x123), region = 28  ;;  %p778_p12 = scmp.eq.s32.totalorder (!%p777_p5), %s609_s13, 0 }
  0x42   : > { %539 = dma.done.wait (%p778_p12), [#allocation3], 128   ;;  %p779_p1 = pmov %p778_p12 }
  0x43   : > { %s712_s19 = sand.u32 1, %s556_s10   ;;  %p780_p6 = scmp.ne.s32.totalorder %s770_s20, 0 }
  0x44   : > { %541 = vsyncadd (%p779_p1), [#allocation3], 4294967168  ;;  %s380_s24 = smul.u32 80, %s712_s19  ;;  %s151_s25 = scalar_lea.sflag [#allocation6], %s712_s19 }
  0x46   : > { %s154_s26 = scalar_lea.vmem [#allocation5], %s380_s24 }
  0x47   : > { %543 = dma.done.wait (%p780_p6), %s151_s25, 1280  }
  0x48   : > { %545 = vsyncadd (%p780_p6), %s151_s25, 4294966016  ;;  %v571_v0 = vmov 0.0   ;;  %v187_v1 = vld [vmem:[%s154_s26 + $0x48] sm:$0xff]  ;;  %v186_v2 = vld [vmem:[%s154_s26 + $0x40] sm:$0xff]  ;;  %vm188_vm0 = vcmask 326656   ;;  %s370_s20 = sshll.u32 %s712_s19, 4 }
  0x49   : > { %256 = vmatprep.mubr.f32.mxu0 %v571_v0  ;;  %v185_v3 = vld [vmem:[%s154_s26 + $0x38] sm:$0xff]  ;;  %214 = vmatprep.subr.mxu0 %v187_v1  ;;  %v184_v4 = vld [vmem:[%s154_s26 + $0x30] sm:$0xff]  ;;  %v183_v5 = vld [vmem:[%s154_s26 + $0x28] sm:$0xff]  ;;  %s174_s23 = scalar_lea.vmem [#allocation7], %s370_s20  ;;  %s378_s7 = sshll.u32 %s609_s13, 8 }
  0x4a   : > { %215 = vmatpush1.msra.mxu0 %v186_v2  ;;  %v182_v6 = vld [vmem:[%s154_s26 + $0x20] sm:$0xff]  ;;  %v181_v7 = vld [vmem:[%s154_s26 + $0x18] sm:$0xff]  ;;  %v180_v8 = vld [vmem:[%s154_s26 + $0x10] sm:$0xff]  ;;  %s280_s28 = sshll.u32 %s174_s23, 4  ;;  %s278_s29 = scalar_lea.hbm %s764_s2, %s378_s7  ;;  %s722_s28 = int_to_ptr.vmem [resolvable:$true] %s280_s28 }
  0x4b   : > { %216 = vmatprep.subr.mxu0 %v185_v3  ;;  %v179_v9 = vld [vmem:[%s154_s26 + $0x8] sm:$0xff]  ;;  %v178_v10 = vld [vmem:[%s154_s26] sm:$0xff]  ;;  %s266_s30 = scalar_lea.sflag [#allocation4], %s712_s19  ;;  %s496_s27 = scalar_lea.vmem %s722_s28, 256 }
  0x4c   : > { %217 = vmatpush1.msra.mxu0 %v184_v4  ;;  %v177_v11 = vld [vmem:[#allocation2] sm:$0xff]  ;;  %p497_p13 = scmp.ne.s32.totalorder %s722_s28, %s496_s27  ;;  %p781_p3 = scmp.ne.s32.totalorder %s771_s21, 0 }
  0x4d   : > { %218 = vmatprep.subr.mxu0 %v183_v5  ;;  %s572_s13 = smov [#allocation7]  }
  0x4e   : > { %219 = vmatpush1.msra.mxu0 %v182_v6  ;;  %p498_p7 = pnand %p497_p13, %p781_p3  ;;  %s500_s3 = sshll.u32 %s572_s13, 4  ;;  %s501_s3 = int_to_ptr.vmem [resolvable:$false] %s500_s3 }
  0x4f   : > { %220 = vmatprep.subr.mxu0 %v181_v7  ;;  %s502_s4 = scalar_lea.vmem %s501_s3, 512  ;;  %p503_p9 = scmp.lt.s32.totalorder %s722_s28, %s501_s3 }
  0x50   : > { %221 = vmatpush1.msra.mxu0 %v180_v8  ;;  %p499_p8 = pneg %p498_p7  ;;  %p504_p10 = scmp.lt.s32.totalorder %s502_s4, %s496_s27 }
  0x51   : > { %222 = vmatprep.subr.mxu0 %v179_v9 }
  0x52   : > { %223 = vmatpush1.msra.mxu0 %v178_v10  ;;  %p505_p2 = por %p504_p10, %p503_p9 }
  0x53   : > { %371 = vmatmul.mubr.msk.f32.vlgmr.msra.gmra.mxu0 %vm188_vm0, %v177_v11 }
  0x54   : > { %p506_p0 = pnand %p505_p2, %p499_p8 }
 0x113   : > { %v258_v12 = vpop.f32.mrf.mxu0 }
 0x114   : > { %263 = vst [vmem:[%s174_s23] sm:$0xff] %v258_v12 }
 0x115   : > { %v260_v13 = vpop.f32.mrf.mxu0 }
 0x116   : > { %264 = vst [vmem:[%s174_s23 + $0x8] sm:$0xff] %v260_v13 }
 0x117   : > { %509 = shalt.err (!%p506_p0)
}
 0x118   : > { %s510_s5 = scalar_lea.hbm %s278_s29, 256  ;;  %s514_s14 = scalar_lea.hbm %s764_s2, 512 }
 0x119   : > { %p511_p4 = scmp.ne.s32.totalorder %s278_s29, %s510_s5  ;;  %p515_p12 = scmp.lt.s32.totalorder %s278_s29, %s764_s2 }
 0x11a   : > { %p516_p1 = scmp.lt.s32.totalorder %s514_s14, %s510_s5 }
 0x11b   : > { %p512_p11 = pnand %p511_p4, %p781_p3 }
 0x11c   : > { %p517_p6 = por %p516_p1, %p515_p12 }
 0x11d   : > { %p513_p5 = pneg %p512_p11 }
 0x11f   : > { %p518_p13 = pnand %p517_p6, %p513_p5 }
 0x121   : > { %521 = shalt.err (!%p518_p13)
}
 0x122   : > { %387 = dma.vmem_to_hbm [thread:$0]  (%p781_p3), %s722_s28, 256, %s278_s29, %s266_s30  }
 0x123 PF: > { %s292_s25 = sand.u32 1, %s552_s9   ;;  %p782_p7 = scmp.ne.s32.totalorder %s772_s22, 0 }
 0x124   : > { %p783_p8 = scmp.ge.s32.totalorder %s564_s12, 2  ;;  %s293_s26 = scalar_lea.sflag [#allocation4], %s292_s25 }
 0x126   : > { %p398_p9 = pnand %p783_p8, %p782_p7 }
 0x128   : > { %p399_p10 = pneg %p398_p9 }
 0x12a   : > { %547 = dma.done.wait (%p399_p10), %s293_s26, 256  }
 0x12b   : > { %549 = vsyncadd (%p399_p10), %s293_s26, 4294967040  ;;  %p16_p2 = scmp.ge.s32.totalorder %s613_s15, 4   ;;  %s784_s9 = smov %s556_s10 }
 0x12c   : > { %s785_s10 = smov %s560_s11  ;;  %s786_s11 = smov %s625_s18 }
 0x12d   : > { %s787_s12 = smov %s613_s15  ;;  %18 = sbr.rel (!%p16_p2) target bundleno = 6 (0x6), region = 78 }
 0x132   :  { %298 = vsyncpa [#allocation3], 1 }
 0x133   :  { %300 = vsyncpa [#allocation3 + $0x1], 1 }
 0x134   :  { %301 = vsyncpa [#allocation6], 1 }
 0x135   :  { %303 = vsyncpa [#allocation6 + $0x1], 1 }
 0x136   :  { %304 = vsyncpa [#allocation4], 1 }
 0x137   :  { %306 = vsyncpa [#allocation4 + $0x1], 1 }

</bundles_post_ra>
